<compile_context>
chip_gen: v7x
topology: tpu7x:2x2x1
jax: 0.10.0
libtpu: 0.0.40
codegen_flags: <defaults>
</compile_context>

<pallas_src>
import jax
import jax.numpy as jnp
import numpy as np
from jax.experimental import pallas as pl
from jax.experimental.pallas import tpu as pltpu

_HIGHEST = jax.lax.Precision.HIGHEST


def _softplus(x):
    # Matches torch.nn.functional.softplus(beta=1, threshold=20).
    return jnp.where(x > 20.0, x, jnp.log1p(jnp.exp(jnp.minimum(x, 20.0))))


def _round_up(n, m):
    return ((n + m - 1) // m) * m


def mlp_nocross_kernel(x_ref, w1_ref, b1_ref, w2_ref, b2_ref, wq_ref, bq_ref,
                       tri_ref, o_ref):
    x = x_ref[...]

    # layer1 + relu
    h1 = jnp.dot(x, w1_ref[...], precision=_HIGHEST,
                 preferred_element_type=jnp.float32) + b1_ref[...]
    h1 = jnp.maximum(h1, 0.0)

    # layer2 + relu
    h2 = jnp.dot(h1, w2_ref[...], precision=_HIGHEST,
                 preferred_element_type=jnp.float32) + b2_ref[...]
    h2 = jnp.maximum(h2, 0.0)

    # All quantile heads at once: raw[:, i] = layers[i](h2)   -> (TB, Q)
    raw = jnp.dot(h2, wq_ref[...], precision=_HIGHEST,
                  preferred_element_type=jnp.float32) + bq_ref[...]

    # adj[:, 0] = raw[:, 0]; adj[:, i>=1] = softplus(raw[:, i])
    lane = jax.lax.broadcasted_iota(jnp.int32, raw.shape, 1)
    adj = jnp.where(lane == 0, raw, _softplus(raw))

    # out[:, i] = sum_{j<=i} adj[:, j]  via trace-time constant prefix matrix
    # tri[j, i] = 1 if j <= i  (shape (Q, Q)).
    o_ref[...] = jnp.dot(adj, tri_ref[...], precision=_HIGHEST,
                         preferred_element_type=jnp.float32)


def mlp_nocross_forward(x, params, n_quantiles, *, block_b=1024):
    """x: (B, input_dim) float32 -> (B, n_quantiles) float32."""
    w1, b1, w2, b2, wq, bq = params
    B, D = x.shape
    H = w1.shape[1]
    Q = n_quantiles
    assert wq.shape == (H, Q) and bq.shape == (1, Q)

    # Batch tile: multiple of 8 sublanes; pad the batch to a multiple of TB.
    TB = min(block_b, _round_up(B, 8))
    Bp = _round_up(B, TB)
    if Bp != B:
        x = jnp.pad(x, ((0, Bp - B), (0, 0)))
    grid = (Bp // TB,)

    # Trace-time constant prefix-sum matrix: tri[j, i] = 1 if j <= i.
    tri = jnp.asarray(np.triu(np.ones((Q, Q), dtype=np.float32)))

    out = pl.pallas_call(
        mlp_nocross_kernel,
        out_shape=jax.ShapeDtypeStruct((Bp, Q), jnp.float32),
        grid_spec=pltpu.PrefetchScalarGridSpec(
            num_scalar_prefetch=0,
            grid=grid,
            in_specs=[
                # x: tiled along the batch axis (pipelined HBM->VMEM per step).
                pl.BlockSpec((TB, D), lambda i: (i, 0)),
                # Weights / biases: whole-array blocks with constant index maps,
                # so they are DMA'd once and stay VMEM-resident across the grid.
                pl.BlockSpec((D, H), lambda i: (0, 0)),
                pl.BlockSpec((1, H), lambda i: (0, 0)),
                pl.BlockSpec((H, H), lambda i: (0, 0)),
                pl.BlockSpec((1, H), lambda i: (0, 0)),
                pl.BlockSpec((H, Q), lambda i: (0, 0)),
                pl.BlockSpec((1, Q), lambda i: (0, 0)),
                pl.BlockSpec((Q, Q), lambda i: (0, 0)),
            ],
            out_specs=pl.BlockSpec((TB, Q), lambda i: (i, 0)),
        ),
        compiler_params=pltpu.CompilerParams(
            dimension_semantics=("parallel",),
            # Explicit budget; tiny usage (~1.2 MiB at TB=1024), safe on v7x (64 MiB).
            vmem_limit_bytes=32 * 1024 * 1024,
        ),
    )(x, w1, b1, w2, b2, wq, bq, tri)

    return out[:B] if Bp != B else out


def init_params(key, input_dim, n_hidden, n_quantiles):
    ks = jax.random.split(key, 6)
    # Shapes match the PyTorch module's Linear layers, stored transposed: (in, out).
    w1 = jax.random.normal(ks[0], (input_dim, n_hidden), jnp.float32) * 0.2
    b1 = jax.random.normal(ks[1], (1, n_hidden), jnp.float32) * 0.1
    w2 = jax.random.normal(ks[2], (n_hidden, n_hidden), jnp.float32) * 0.2
    b2 = jax.random.normal(ks[3], (1, n_hidden), jnp.float32) * 0.1
    # n_quantiles heads of Linear(n_hidden, 1) fused into (n_hidden, n_quantiles).
    wq = jax.random.normal(ks[4], (n_hidden, n_quantiles), jnp.float32) * 0.2
    bq = jax.random.normal(ks[5], (1, n_quantiles), jnp.float32) * 0.1
    return (w1, b1, w2, b2, wq, bq)


def reference_forward(x, params, n_quantiles):
    """Pure-JAX reimplementation of the PyTorch forward, for verification."""
    w1, b1, w2, b2, wq, bq = params
    h = jnp.maximum(jnp.dot(x, w1, precision=_HIGHEST) + b1, 0.0)
    h = jnp.maximum(jnp.dot(h, w2, precision=_HIGHEST) + b2, 0.0)
    raw = jnp.dot(h, wq, precision=_HIGHEST) + bq
    outs_prev = raw[:, 0:1]
    outs = outs_prev
    for i in range(1, n_quantiles):
        outs_i = _softplus(raw[:, i:i + 1]) + outs_prev
        outs = jnp.concatenate([outs, outs_i], axis=-1)
        outs_prev = outs_i
    return outs


if __name__ == "__main__":
    batch = 16
    input_dim = 16
    n_hidden = 32
    n_quantiles = 5

    key = jax.random.PRNGKey(0)
    k_x, k_p = jax.random.split(key)
    x = jax.random.normal(k_x, (batch, input_dim), jnp.float32)
    params = init_params(k_p, input_dim, n_hidden, n_quantiles)

    out = mlp_nocross_forward(x, params, n_quantiles)
    out = jax.block_until_ready(out)
    ref = reference_forward(x, params, n_quantiles)
    np.testing.assert_allclose(np.asarray(out), np.asarray(ref), rtol=1e-5, atol=1e-5)

    # Also exercise the multi-step gridded / pipelined path (with batch padding).
    x2 = jax.random.normal(jax.random.PRNGKey(1), (500, input_dim), jnp.float32)
    out2 = jax.block_until_ready(
        mlp_nocross_forward(x2, params, n_quantiles, block_b=128))
    ref2 = reference_forward(x2, params, n_quantiles)
    np.testing.assert_allclose(np.asarray(out2), np.asarray(ref2),
                               rtol=1e-5, atol=1e-5)

    print("KERNEL_OK")
</pallas_src>

<mosaic_0001>
module attributes {stable_mosaic.version = 11 : i64} {
  func.func @mlp_nocross_kernel(%arg0: i32, %arg1: memref<16x16xf32, #tpu.memory_space<vmem>>, %arg2: memref<16x32xf32, #tpu.memory_space<vmem>>, %arg3: memref<1x32xf32, #tpu.memory_space<vmem>>, %arg4: memref<32x32xf32, #tpu.memory_space<vmem>>, %arg5: memref<1x32xf32, #tpu.memory_space<vmem>>, %arg6: memref<32x5xf32, #tpu.memory_space<vmem>>, %arg7: memref<1x5xf32, #tpu.memory_space<vmem>>, %arg8: memref<5x5xf32, #tpu.memory_space<vmem>>, %arg9: memref<16x5xf32, #tpu.memory_space<vmem>>) attributes {dimension_semantics = [#tpu.dimension_semantics<parallel>], iteration_bounds = array<i64: 1>, scalar_prefetch = 0 : i64, scratch_operands = 0 : i64, tpu.core_type = #tpu.core_type<tc>, window_params = [{transform_indices = @transform_0, window_bounds = array<i64: 16, 16>}, {pipeline_mode = #tpu.pipeline_mode<synchronous>, transform_indices = @transform_1, window_bounds = array<i64: 16, 32>}, {pipeline_mode = #tpu.pipeline_mode<synchronous>, transform_indices = @transform_2, window_bounds = array<i64: 1, 32>}, {pipeline_mode = #tpu.pipeline_mode<synchronous>, transform_indices = @transform_3, window_bounds = array<i64: 32, 32>}, {pipeline_mode = #tpu.pipeline_mode<synchronous>, transform_indices = @transform_4, window_bounds = array<i64: 1, 32>}, {pipeline_mode = #tpu.pipeline_mode<synchronous>, transform_indices = @transform_5, window_bounds = array<i64: 32, 5>}, {pipeline_mode = #tpu.pipeline_mode<synchronous>, transform_indices = @transform_6, window_bounds = array<i64: 1, 5>}, {pipeline_mode = #tpu.pipeline_mode<synchronous>, transform_indices = @transform_7, window_bounds = array<i64: 5, 5>}, {transform_indices = @transform_8, window_bounds = array<i64: 16, 5>}]} {
    %c0 = arith.constant 0 : index
    %c0_0 = arith.constant 0 : index
    %0 = vector.load %arg1[%c0, %c0_0] : memref<16x16xf32, #tpu.memory_space<vmem>>, vector<16x16xf32>
    %c0_1 = arith.constant 0 : index
    %c0_2 = arith.constant 0 : index
    %1 = vector.load %arg2[%c0_1, %c0_2] : memref<16x32xf32, #tpu.memory_space<vmem>>, vector<16x32xf32>
    %cst = arith.constant dense<0.000000e+00> : vector<16x32xf32>
    %2 = tpu.matmul %0, %1, %cst {dimension_numbers = #tpu.dot_dimension_numbers<[1], [0], [0], [1], [0, 0, 1, 1], [], []>, precision = #tpu.contract_precision<fp32>} : vector<16x16xf32>, vector<16x32xf32>, vector<16x32xf32> -> vector<16x32xf32>
    %c0_3 = arith.constant 0 : index
    %c0_4 = arith.constant 0 : index
    %3 = vector.load %arg3[%c0_3, %c0_4] : memref<1x32xf32, #tpu.memory_space<vmem>>, vector<1x32xf32>
    %4 = vector.broadcast %3 : vector<1x32xf32> to vector<16x32xf32>
    %5 = arith.addf %2, %4 : vector<16x32xf32>
    %cst_5 = arith.constant 0.000000e+00 : f32
    %6 = vector.broadcast %cst_5 : f32 to vector<16x32xf32>
    %7 = arith.maximumf %5, %6 : vector<16x32xf32>
    %c0_6 = arith.constant 0 : index
    %c0_7 = arith.constant 0 : index
    %8 = vector.load %arg4[%c0_6, %c0_7] : memref<32x32xf32, #tpu.memory_space<vmem>>, vector<32x32xf32>
    %cst_8 = arith.constant dense<0.000000e+00> : vector<16x32xf32>
    %9 = tpu.matmul %7, %8, %cst_8 {dimension_numbers = #tpu.dot_dimension_numbers<[1], [0], [0], [1], [0, 0, 1, 1], [], []>, precision = #tpu.contract_precision<fp32>} : vector<16x32xf32>, vector<32x32xf32>, vector<16x32xf32> -> vector<16x32xf32>
    %c0_9 = arith.constant 0 : index
    %c0_10 = arith.constant 0 : index
    %10 = vector.load %arg5[%c0_9, %c0_10] : memref<1x32xf32, #tpu.memory_space<vmem>>, vector<1x32xf32>
    %11 = vector.broadcast %10 : vector<1x32xf32> to vector<16x32xf32>
    %12 = arith.addf %9, %11 : vector<16x32xf32>
    %cst_11 = arith.constant 0.000000e+00 : f32
    %13 = vector.broadcast %cst_11 : f32 to vector<16x32xf32>
    %14 = arith.maximumf %12, %13 : vector<16x32xf32>
    %c0_12 = arith.constant 0 : index
    %c0_13 = arith.constant 0 : index
    %15 = vector.load %arg6[%c0_12, %c0_13] : memref<32x5xf32, #tpu.memory_space<vmem>>, vector<32x5xf32>
    %cst_14 = arith.constant dense<0.000000e+00> : vector<16x5xf32>
    %16 = tpu.matmul %14, %15, %cst_14 {dimension_numbers = #tpu.dot_dimension_numbers<[1], [0], [0], [1], [0, 0, 1, 1], [], []>, precision = #tpu.contract_precision<fp32>} : vector<16x32xf32>, vector<32x5xf32>, vector<16x5xf32> -> vector<16x5xf32>
    %c0_15 = arith.constant 0 : index
    %c0_16 = arith.constant 0 : index
    %17 = vector.load %arg7[%c0_15, %c0_16] : memref<1x5xf32, #tpu.memory_space<vmem>>, vector<1x5xf32>
    %18 = vector.broadcast %17 : vector<1x5xf32> to vector<16x5xf32>
    %19 = arith.addf %16, %18 : vector<16x5xf32>
    %20 = tpu.iota {dimensions = array<i32: 1>} : vector<16x5xi32>
    %c0_i32 = arith.constant 0 : i32
    %21 = vector.broadcast %c0_i32 : i32 to vector<16x5xi32>
    %22 = arith.cmpi eq, %20, %21 : vector<16x5xi32>
    %cst_17 = arith.constant 2.000000e+01 : f32
    %23 = vector.broadcast %cst_17 : f32 to vector<16x5xf32>
    %24 = arith.cmpf ogt, %19, %23 : vector<16x5xf32>
    %cst_18 = arith.constant 2.000000e+01 : f32
    %25 = vector.broadcast %cst_18 : f32 to vector<16x5xf32>
    %26 = arith.minimumf %19, %25 : vector<16x5xf32>
    %27 = math.exp %26 : vector<16x5xf32>
    %28 = math.log1p %27 : vector<16x5xf32>
    %29 = arith.select %24, %19, %28 : vector<16x5xi1>, vector<16x5xf32>
    %30 = arith.select %22, %19, %29 : vector<16x5xi1>, vector<16x5xf32>
    %c0_19 = arith.constant 0 : index
    %c0_20 = arith.constant 0 : index
    %31 = vector.load %arg8[%c0_19, %c0_20] : memref<5x5xf32, #tpu.memory_space<vmem>>, vector<5x5xf32>
    %cst_21 = arith.constant dense<0.000000e+00> : vector<16x5xf32>
    %32 = tpu.matmul %30, %31, %cst_21 {dimension_numbers = #tpu.dot_dimension_numbers<[1], [0], [0], [1], [0, 0, 1, 1], [], []>, precision = #tpu.contract_precision<fp32>} : vector<16x5xf32>, vector<5x5xf32>, vector<16x5xf32> -> vector<16x5xf32>
    %c0_22 = arith.constant 0 : index
    %c0_23 = arith.constant 0 : index
    %33 = vector.load %arg9[%c0_22, %c0_23] : memref<16x5xf32, #tpu.memory_space<vmem>>, vector<16x5xf32>
    tpu.vector_store %arg9[%c0_22, %c0_23], %32 {strides = array<i32>} : memref<16x5xf32, #tpu.memory_space<vmem>>, vector<16x5xf32>,
    return
  }
  func.func @transform_0(%arg0: i32) -> (i32, i32) {
    %c0_i32 = arith.constant 0 : i32
    %c0_i32_0 = arith.constant 0 : i32
    return %arg0, %c0_i32 : i32, i32
  }
  func.func @transform_1(%arg0: i32) -> (i32, i32) {
    %c0_i32 = arith.constant 0 : i32
    %c0_i32_0 = arith.constant 0 : i32
    %c0_i32_1 = arith.constant 0 : i32
    return %c0_i32, %c0_i32_0 : i32, i32
  }
  func.func @transform_2(%arg0: i32) -> (i32, i32) {
    %c0_i32 = arith.constant 0 : i32
    %c0_i32_0 = arith.constant 0 : i32
    %c0_i32_1 = arith.constant 0 : i32
    return %c0_i32, %c0_i32_0 : i32, i32
  }
  func.func @transform_3(%arg0: i32) -> (i32, i32) {
    %c0_i32 = arith.constant 0 : i32
    %c0_i32_0 = arith.constant 0 : i32
    %c0_i32_1 = arith.constant 0 : i32
    return %c0_i32, %c0_i32_0 : i32, i32
  }
  func.func @transform_4(%arg0: i32) -> (i32, i32) {
    %c0_i32 = arith.constant 0 : i32
    %c0_i32_0 = arith.constant 0 : i32
    %c0_i32_1 = arith.constant 0 : i32
    return %c0_i32, %c0_i32_0 : i32, i32
  }
  func.func @transform_5(%arg0: i32) -> (i32, i32) {
    %c0_i32 = arith.constant 0 : i32
    %c0_i32_0 = arith.constant 0 : i32
    %c0_i32_1 = arith.constant 0 : i32
    return %c0_i32, %c0_i32_0 : i32, i32
  }
  func.func @transform_6(%arg0: i32) -> (i32, i32) {
    %c0_i32 = arith.constant 0 : i32
    %c0_i32_0 = arith.constant 0 : i32
    %c0_i32_1 = arith.constant 0 : i32
    return %c0_i32, %c0_i32_0 : i32, i32
  }
  func.func @transform_7(%arg0: i32) -> (i32, i32) {
    %c0_i32 = arith.constant 0 : i32
    %c0_i32_0 = arith.constant 0 : i32
    %c0_i32_1 = arith.constant 0 : i32
    return %c0_i32, %c0_i32_0 : i32, i32
  }
  func.func @transform_8(%arg0: i32) -> (i32, i32) {
    %c0_i32 = arith.constant 0 : i32
    %c0_i32_0 = arith.constant 0 : i32
    return %arg0, %c0_i32 : i32, i32
  }
}

</mosaic_0001>

<bundles_post_ra>
// kernel: tpu_custom_call.1
= control target key start
LH: loop header
LB: loop body
LE: loop exit
PB: predicated region body
PF: predicated region fallthrough
CT: control target
= control target key end

     0   :  { %13 = vsyncpa [#allocation3], 0  ;;  %s2937_s0 = inlined_call_operand.vmem [shape: f32[16,16], index: 0, kind: input, shape index: {}]   ;;  %s2938_s1 = inlined_call_operand.hbm [shape: f32[16,32], index: 1, kind: input, shape index: {}]   ;;  %s2939_s2 = inlined_call_operand.vmem [shape: f32[1,32], index: 2, kind: input, shape index: {}]   ;;  %s2940_s3 = inlined_call_operand.vmem [shape: f32[32,32], index: 3, kind: input, shape index: {}]   ;;  %s2941_s4 = inlined_call_operand.vmem [shape: f32[1,32], index: 4, kind: input, shape index: {}]   ;;  %s2942_s5 = inlined_call_operand.vmem [shape: f32[32,5], index: 5, kind: input, shape index: {}]   ;;  %s2943_s6 = inlined_call_operand.hbm [shape: f32[1,5], index: 6, kind: input, shape index: {}]   ;;  %s2944_s7 = inlined_call_operand.vmem [shape: f32[5,5], index: 7, kind: input, shape index: {}]   ;;  %s2945_s8 = inlined_call_operand.vmem [shape: f32[16,5], index: 8, kind: output, shape index: {}]  }
   0x1   :  { %14 = vsyncpa [#allocation5], 0  ;;  %s2759_s27 = smov [#allocation2]   ;;  %s2711_s9 = scalar_lea.hbm %s2938_s1, 256 }
   0x2   :  { %s22_s28 = sshll.u32 %s2759_s27, 4  ;;  %p2712_p0 = scmp.ne.s32.totalorder %s2938_s1, %s2711_s9  ;;  %s23_s28 = int_to_ptr.vmem [resolvable:$true] %s22_s28 }
   0x3   :  { %p2715_p1 = scmp.lt.u32.totalorder %s2711_s9, %s2938_s1 }
   0x5   :  { %p2717_p2 = pnand %p2715_p1, %p2712_p0 }
   0x7   :  { %2720 = shalt.err (!%p2717_p2)
}
   0x8   :  { %s2721_s14 = scalar_lea.vmem %s23_s28, 256  ;;  %p2726_p4 = scmp.lt.s32.totalorder %s23_s28, %s23_s28 }
   0x9   :  { %p2722_p3 = scmp.ne.s32.totalorder %s23_s28, %s2721_s14  ;;  %p2727_p5 = scmp.lt.s32.totalorder %s2721_s14, %s2721_s14 }
   0xb   :  { %p2728_p6 = por %p2727_p5, %p2726_p4 }
   0xd   :  { %p2729_p7 = pnand %p2728_p6, %p2722_p3 }
   0xf   :  { %2732 = shalt.err (!%p2729_p7)
}
  0x10   :  { %s2760_s15 = smov 128   ;;  %s2761_s16 = smov 8  }
  0x11   :  { %28 = dma.hbm_to_vmem [thread:$0]  %s2938_s1, 256, %s23_s28, [#allocation3], %s2760_s15, %s2760_s15, %s2761_s16  }
  0x12   :  { %s2762_s19 = smov [#allocation4]   ;;  %s2733_s23 = scalar_lea.hbm %s2943_s6, 16 }
  0x13   :  { %s43_s20 = sshll.u32 %s2762_s19, 4  ;;  %p2734_p8 = scmp.ne.s32.totalorder %s2943_s6, %s2733_s23  ;;  %s44_s20 = int_to_ptr.vmem [resolvable:$true] %s43_s20 }
  0x14   :  { %p2737_p9 = scmp.lt.u32.totalorder %s2733_s23, %s2943_s6 }
  0x16   :  { %p2739_p10 = pnand %p2737_p9, %p2734_p8 }
  0x18   :  { %2742 = shalt.err (!%p2739_p10)
}
  0x19   :  { %s2743_s29 = scalar_lea.vmem %s44_s20, 16  ;;  %s2747_s1 = scalar_lea.vmem %s44_s20, 32 }
  0x1a   :  { %p2744_p11 = scmp.ne.s32.totalorder %s44_s20, %s2743_s29  ;;  %p2748_p12 = scmp.lt.s32.totalorder %s44_s20, %s44_s20 }
  0x1b   :  { %p2749_p13 = scmp.lt.s32.totalorder %s2747_s1, %s2743_s29 }
  0x1d   :  { %p2750_p0 = por %p2749_p13, %p2748_p12 }
  0x1f   :  { %p2751_p1 = pnand %p2750_p0, %p2744_p11 }
  0x21   :  { %2754 = shalt.err (!%p2751_p1)
}
  0x22   :  { %46 = dma.hbm_to_vmem [thread:$0]  %s2943_s6, 16, %s44_s20, [#allocation5]  }
  0x23   :  { %2755 = dma.done.wait [#allocation3], 256  }
  0x24   :  { %2756 = vsyncadd [#allocation3], 4294967040 }
  0x25   :  { %2757 = dma.done.wait [#allocation5], 16  }
  0x26   :  { %2758 = vsyncadd [#allocation5], 4294967280  ;;  %vm66_vm0 = vcmask 130048   ;;  %v57_v0 = vld [vmem:[#allocation2] sm:$0xff]  ;;  %v58_v1 = vld [vmem:[#allocation2 + $0x8] sm:$0xff]  ;;  %vm588_vm1 = vcmask 261120  }
  0x27   :  { %v55_v2 = vld [vmem:[%s2937_s0] sm:$0xff]  ;;  %v74_v3 = vand.u32 4294901760, %v57_v0  ;;  %v77_v4 = vand.u32 4294901760, %v58_v1  ;;  %v56_v5 = vld [vmem:[%s2937_s0 + $0x8] sm:$0xff]  ;;  %v579_v37 = vld [vmem:[%s2940_s3 + $0x10] sm:$0xff]  ;;  %vm1711_vm2 = vcmask 1044480  }
  0x28   :  { %v68_v6 = vsel %vm66_vm0, %v55_v2, 0  ;;  %v71_v7 = vsel %vm66_vm0, %v56_v5, 0  ;;  %v577_v30 = vld [vmem:[%s2940_s3] sm:$0xff]  ;;  %v578_v31 = vld [vmem:[%s2940_s3 + $0x8] sm:$0xff]  ;;  %v580_v38 = vld [vmem:[%s2940_s3 + $0x18] sm:$0xff]  ;;  %v602_v39 = vand.u32 4294901760, %v579_v37 }
  0x29   :  { %v140_v8 = vand.u32 4294901760, %v68_v6  ;;  %v2533_v9 = vpack.c.bf16 %v77_v4, %v74_v3  ;;  %v150_v10 = vand.u32 4294901760, %v71_v7  ;;  %v162_v11 = vsub.f32 %v57_v0, %v74_v3  ;;  %v2212_v62 = vld [vmem:[%s2939_s2] ss:$0 sm:$0xff] }
  0x2a   :  { %v169_v12 = vsub.f32 %v58_v1, %v77_v4  ;;  %v596_v32 = vand.u32 4294901760, %v577_v30  ;;  %v599_v33 = vand.u32 4294901760, %v578_v31  ;;  %v605_v40 = vand.u32 4294901760, %v580_v38 }
  0x2b   :  { %v141_v13 = vsub.f32 %v68_v6, %v140_v8  ;;  %2534 = vmatprep.subr.bf16.mxu0 %v2533_v9  ;;  %v151_v14 = vsub.f32 %v71_v7, %v150_v10  ;;  %v163_v15 = vand.u32 4294901760, %v162_v11  ;;  %v700_v46 = vsub.f32 %v579_v37, %v602_v39 }
  0x2c   :  { %v170_v16 = vand.u32 4294901760, %v169_v12  ;;  %2536 = vmatpush3.bf16.msra.mxu0 %v2533_v9  ;;  %v2541_v28 = vpack.c.bf16 %v169_v12, %v162_v11  ;;  %v2844_v34 = vpack.c.bf16 %v599_v33, %v596_v32  ;;  %v686_v35 = vsub.f32 %v577_v30, %v596_v32 }
  0x2d   :  { %v142_v17 = vand.u32 4294901760, %v141_v13  ;;  %v152_v18 = vand.u32 4294901760, %v151_v14  ;;  %v164_v19 = vsub.f32 %v162_v11, %v163_v15  ;;  %v693_v36 = vsub.f32 %v578_v31, %v599_v33 }
  0x2e   :  { %v171_v20 = vsub.f32 %v169_v12, %v170_v16  ;;  %v2549_v29 = vpack.c.bf16 %v170_v16, %v163_v15  ;;  %2558 = vmatprep.subr.bf16.mxu1 %v2844_v34  ;;  %v687_v41 = vand.u32 4294901760, %v686_v35  ;;  %v2854_v43 = vpack.c.bf16 %v605_v40, %v602_v39 }
  0x2f   :  { %v143_v21 = vsub.f32 %v141_v13, %v142_v17  ;;  %v153_v22 = vsub.f32 %v151_v14, %v152_v18  ;;  %v165_v23 = vand.u32 4294901760, %v164_v19  ;;  %v694_v42 = vand.u32 4294901760, %v693_v36  ;;  %2560 = vmatpush3.bf16.msra.mxu1 %v2844_v34 }
  0x30   :  { %v172_v24 = vand.u32 4294901760, %v171_v20  ;;  %v688_v44 = vsub.f32 %v686_v35, %v687_v41  ;;  %v707_v47 = vsub.f32 %v580_v38, %v605_v40  ;;  %2562 = vmatprep.subr.bf16.mxu1 %v2854_v43  ;;  %v701_v50 = vand.u32 4294901760, %v700_v46 }
  0x31   :  { %v144_v25 = vand.u32 4294901760, %v143_v21  ;;  %v154_v26 = vand.u32 4294901760, %v153_v22  ;;  %v695_v45 = vsub.f32 %v693_v36, %v694_v42  ;;  %v2573_v58 = vpack.c.bf16 %v693_v36, %v686_v35 }
  0x32   :  { %v2537_v27 = vpack.c.bf16 %v172_v24, %v165_v23  ;;  %v689_v48 = vand.u32 4294901760, %v688_v44  ;;  %v708_v51 = vand.u32 4294901760, %v707_v47  ;;  %v702_v53 = vsub.f32 %v700_v46, %v701_v50  ;;  %v1127_v24 = vld [vmem:[%s2942_s5 + $0x10] sm:$0xff] }
  0x33   :  { %2333 = vmatprep.mubr.f32.mxu0 %v144_v25  ;;  %v696_v49 = vand.u32 4294901760, %v695_v45  ;;  %2564 = vmatpush3.bf16.msra.mxu1 %v2854_v43  ;;  %v2577_v59 = vpack.c.bf16 %v707_v47, %v700_v46  ;;  %v2589_v60 = vpack.c.bf16 %v694_v42, %v687_v41  ;;  %v1128_v25 = vld [vmem:[%s2942_s5 + $0x18] sm:$0xff]  ;;  %vm1704_vm6 = vcmask 39936  }
  0x34   :  { %2334 = vmatmul.mubr.f32.vlgmr.msra.gmra.mrb[0].mxu0 %v154_v26  ;;  %2538 = vmatprep.subr.bf16.mxu0 %v2537_v27  ;;  %v709_v54 = vsub.f32 %v707_v47, %v708_v51  ;;  %v703_v55 = vand.u32 4294901760, %v702_v53  ;;  %v2593_v61 = vpack.c.bf16 %v708_v51, %v701_v50  ;;  %v1149_v26 = vand.u32 4294901760, %v1127_v24 }
  0x35   :  { %2540 = vmatpush3.bf16.msra.mxu0 %v2537_v27  ;;  %2340 = vmatprep.mubr.f32.mxu0 %v140_v8  ;;  %v2565_v52 = vpack.c.bf16 %v696_v49, %v689_v48  ;;  %v1152_v27 = vand.u32 4294901760, %v1128_v25  ;;  %v2213_v49 = vld [vmem:[%s2941_s4] ss:$0 sm:$0xff] }
  0x36   :  { %2542 = vmatprep.subr.bf16.mxu0 %v2541_v28  ;;  %v710_v56 = vand.u32 4294901760, %v709_v54  ;;  %v1247_v33 = vsub.f32 %v1127_v24, %v1149_v26 }
  0x37   :  { %2566 = vmatprep.subr.bf16.mxu1 %v2565_v52  ;;  %v2887_v30 = vpack.c.bf16 %v1152_v27, %v1149_v26 }
  0x38   :  { %v2569_v57 = vpack.c.bf16 %v710_v56, %v703_v55  ;;  %v1248_v37 = vand.u32 4294901760, %v1247_v33 }
  0x3a   :  { %v1249_v40 = vsub.f32 %v1247_v33, %v1248_v37 }
  0x3c   :  { %2341 = vmatmul.mubr.f32.vlgmr.msra.gmra.mrb[0].mxu0 %v150_v10  ;;  %v1250_v42 = vand.u32 4294901760, %v1249_v40 }
  0x3d   :  { %2544 = vmatpush3.bf16.msra.mxu0 %v2541_v28  ;;  %2347 = vmatprep.mubr.f32.mxu0 %v141_v13 }
  0x3e   :  { %2546 = vmatprep.subr.bf16.mxu0 %v2533_v9 }
  0x44   :  { %2348 = vmatmul.mubr.f32.vlgmr.msra.gmra.mrb[0].mxu0 %v151_v14 }
  0x45   :  { %2548 = vmatpush3.bf16.msra.mxu0 %v2533_v9  ;;  %2354 = vmatprep.mubr.f32.mxu0 %v142_v17  ;;  %v1125_v17 = vld [vmem:[%s2942_s5] sm:$0xff] }
  0x46   :  { %2550 = vmatprep.subr.bf16.mxu0 %v2549_v29  ;;  %v1143_v19 = vand.u32 4294901760, %v1125_v17 }
  0x48   :  { %v1233_v22 = vsub.f32 %v1125_v17, %v1143_v19 }
  0x4a   :  { %v1234_v28 = vand.u32 4294901760, %v1233_v22 }
  0x4c   :  { %2355 = vmatmul.mubr.f32.vlgmr.msra.gmra.mrb[0].mxu0 %v152_v18  ;;  %v1126_v18 = vld [vmem:[%s2942_s5 + $0x8] sm:$0xff]  ;;  %v1235_v31 = vsub.f32 %v1233_v22, %v1234_v28 }
  0x4d   :  { %2552 = vmatpush3.bf16.msra.mxu0 %v2549_v29  ;;  %2361 = vmatprep.mubr.f32.mxu0 %v140_v8  ;;  %v1146_v20 = vand.u32 4294901760, %v1126_v18 }
  0x4e   :  { %2554 = vmatprep.subr.bf16.mxu0 %v2533_v9  ;;  %v1236_v35 = vand.u32 4294901760, %v1235_v31 }
  0x4f   :  { %v2877_v21 = vpack.c.bf16 %v1146_v20, %v1143_v19  ;;  %v1240_v23 = vsub.f32 %v1126_v18, %v1146_v20 }
  0x51   :  { %v1241_v29 = vand.u32 4294901760, %v1240_v23  ;;  %v2621_v45 = vpack.c.bf16 %v1240_v23, %v1233_v22 }
  0x53   :  { %v1242_v32 = vsub.f32 %v1240_v23, %v1241_v29  ;;  %v2637_v47 = vpack.c.bf16 %v1241_v29, %v1234_v28 }
  0x54   :  { %2362 = vmatmul.mubr.f32.vlgmr.msra.gmra.mrb[0].mxu0 %v150_v10 }
  0x55   :  { %2556 = vmatpush3.bf16.msra.mxu0 %v2533_v9  ;;  %2368 = vmatprep.mubr.f32.mxu0 %v140_v8  ;;  %v1243_v36 = vand.u32 4294901760, %v1242_v32 }
  0x56   :  { %2606 = vmatprep.subr.bf16.mxu0 %v2877_v21 }
  0x57   :  { %v2613_v39 = vpack.c.bf16 %v1243_v36, %v1236_v35 }
  0x5c   :  { %2369 = vmatmul.mubr.f32.vlgmr.msra.gmra.mrb[0].mxu0 %v150_v10 }
  0x5d   :  { %2608 = vmatpush3.bf16.msra.mxu0 %v2877_v21 }
  0x5e   :  { %2610 = vmatprep.subr.bf16.mxu0 %v2887_v30 }
  0x61   :  { %2612 = vmatpush3.bf16.msra.mxu0 %v2887_v30 }
  0x62   :  { %2614 = vmatprep.subr.bf16.mxu0 %v2613_v39 }
 0x12f   :  { %v2370_v63 = vpop.f32.mrb[0].mxu0 }
 0x130   :  { %v2653_v0 = vadd.f32 %v2370_v63, %v2212_v62  ;;  %v565_v1 = vpop.f32.mrb[1].mxu0 }
 0x131   :  { %v2654_v2 = vadd.f32 %v2212_v62, %v565_v1 }
 0x132   :  { %v576_v3 = vmax.f32 %v2653_v0, 0.0 }
 0x133   :  { %v575_v4 = vmax.f32 %v2654_v2, 0.0 }
 0x134   :  { %v593_v5 = vsel %vm588_vm1, %v576_v3, 0 }
 0x135   :  { %v674_v6 = vand.u32 4294901760, %v593_v5  ;;  %v590_v7 = vsel %vm588_vm1, %v575_v4, 0  ;;  %v1703_v4 = vld [vmem:[%s2944_s7] sm:$0x1f] }
 0x136   :  { %v664_v8 = vand.u32 4294901760, %v590_v7 }
 0x137   :  { %v675_v9 = vsub.f32 %v593_v5, %v674_v6  ;;  %v1713_v5 = vsel %vm1711_vm2, %v1703_v4, 0 }
 0x138   :  { %v665_v10 = vsub.f32 %v590_v7, %v664_v8 }
 0x139   :  { %v676_v11 = vand.u32 4294901760, %v675_v9 }
 0x13a   :  { %v666_v12 = vand.u32 4294901760, %v665_v10 }
 0x13b   :  { %v677_v13 = vsub.f32 %v675_v9, %v676_v11 }
 0x13c   :  { %v667_v14 = vsub.f32 %v665_v10, %v666_v12 }
 0x13d   :  { %v678_v16 = vand.u32 4294901760, %v677_v13 }
 0x13e   :  { %v668_v15 = vand.u32 4294901760, %v667_v14 }
 0x140   :  { %2379 = vmatprep.mubr.f32.mxu1 %v668_v15 }
 0x141   :  { %2380 = vmatmul.mubr.f32.vlgmr.msra.gmra.mrb[0].mxu1 %v678_v16 }
 0x142   :  { %2568 = vmatpush3.bf16.msra.mxu1 %v2565_v52  ;;  %2390 = vmatprep.mubr.f32.mxu1 %v664_v8 }
 0x143   :  { %2570 = vmatprep.subr.bf16.mxu1 %v2569_v57 }
 0x146   :  { %2572 = vmatpush3.bf16.msra.mxu1 %v2569_v57 }
 0x147   :  { %2574 = vmatprep.subr.bf16.mxu1 %v2573_v58 }
 0x149   :  { %2391 = vmatmul.mubr.f32.vlgmr.msra.gmra.mrb[0].mxu1 %v674_v6 }
 0x14a   :  { %2576 = vmatpush3.bf16.msra.mxu1 %v2573_v58  ;;  %2401 = vmatprep.mubr.f32.mxu1 %v665_v10 }
 0x14b   :  { %2578 = vmatprep.subr.bf16.mxu1 %v2577_v59 }
 0x14e   :  { %2580 = vmatpush3.bf16.msra.mxu1 %v2577_v59 }
 0x14f   :  { %2582 = vmatprep.subr.bf16.mxu1 %v2844_v34 }
 0x151   :  { %2402 = vmatmul.mubr.f32.vlgmr.msra.gmra.mrb[0].mxu1 %v675_v9 }
 0x152   :  { %2584 = vmatpush3.bf16.msra.mxu1 %v2844_v34  ;;  %2412 = vmatprep.mubr.f32.mxu1 %v666_v12 }
 0x153   :  { %2586 = vmatprep.subr.bf16.mxu1 %v2854_v43 }
 0x156   :  { %2588 = vmatpush3.bf16.msra.mxu1 %v2854_v43 }
 0x157   :  { %2590 = vmatprep.subr.bf16.mxu1 %v2589_v60 }
 0x159   :  { %2413 = vmatmul.mubr.f32.vlgmr.msra.gmra.mrb[0].mxu1 %v676_v11  ;;  %v2214_v11 = vld [vmem:[#allocation4] ss:$0 sm:$0xff] }
 0x15a   :  { %2592 = vmatpush3.bf16.msra.mxu1 %v2589_v60  ;;  %2423 = vmatprep.mubr.f32.mxu1 %v664_v8 }
 0x15b   :  { %2594 = vmatprep.subr.bf16.mxu1 %v2593_v61 }
 0x15e   :  { %2596 = vmatpush3.bf16.msra.mxu1 %v2593_v61 }
 0x15f   :  { %2598 = vmatprep.subr.bf16.mxu1 %v2844_v34 }
 0x161   :  { %2424 = vmatmul.mubr.f32.vlgmr.msra.gmra.mrb[0].mxu1 %v674_v6 }
 0x162   :  { %2600 = vmatpush3.bf16.msra.mxu1 %v2844_v34  ;;  %2434 = vmatprep.mubr.f32.mxu1 %v664_v8  ;;  %v1254_v34 = vsub.f32 %v1128_v25, %v1152_v27  ;;  %v1670_v25 = vlaneseq }
 0x163   :  { %2602 = vmatprep.subr.bf16.mxu1 %v2854_v43 }
 0x164   :  { %v1255_v38 = vand.u32 4294901760, %v1254_v34  ;;  %v2625_v46 = vpack.c.bf16 %v1254_v34, %v1247_v33  ;;  %v1671_v28 = vand.u32 127, %v1670_v25 }
 0x166   :  { %2604 = vmatpush3.bf16.msra.mxu1 %v2854_v43  ;;  %v1256_v41 = vsub.f32 %v1254_v34, %v1255_v38  ;;  %v2641_v48 = vpack.c.bf16 %v1255_v38, %v1248_v37  ;;  %vm1672_vm3 = vcmp.eq.s32.totalorder %v1671_v28, 0 }
 0x168   :  { %v1257_v43 = vand.u32 4294901760, %v1256_v41 }
 0x169   :  { %2435 = vmatmul.mubr.f32.vlgmr.msra.gmra.mrb[0].mxu1 %v674_v6  ;;  %v2907_v6 = vand.u32 4294901760, %v1713_v5 }
 0x16a   :  { %v2617_v44 = vpack.c.bf16 %v1257_v43, %v1250_v42 }
 0x16b   :  { %2503 = vmatprep.subr.mxu1 %v2907_v6  ;;  %v2912_v7 = vsub.f32 %v1713_v5, %v2907_v6 }
 0x16c   :  { %2504 = vmatpush3.msra.mxu1 %v2907_v6 }
 0x16d   :  { %v2915_v8 = vand.u32 4294901760, %v2912_v7 }
 0x16f   :  { %v1805_v9 = vsub.f32 %v2912_v7, %v2915_v8 }
 0x171   :  { %v1806_v10 = vand.u32 4294901760, %v1805_v9 }
 0x173   :  { %2508 = vmatprep.subr.mxu1 %v1806_v10 }
 0x23c   :  { %v2436_v50 = vpop.f32.mrb[0].mxu1 }
 0x23d   :  { %v2655_v51 = vadd.f32 %v2436_v50, %v2213_v49  ;;  %v1113_v52 = vpop.f32.mrb[1].mxu1 }
 0x23e   :  { %v2656_v53 = vadd.f32 %v2213_v49, %v1113_v52 }
 0x23f   :  { %v1124_v54 = vmax.f32 %v2655_v51, 0.0 }
 0x240   :  { %v1123_v55 = vmax.f32 %v2656_v53, 0.0 }
 0x241   :  { %v1140_v56 = vsel %vm588_vm1, %v1124_v54, 0 }
 0x242   :  { %v1221_v57 = vand.u32 4294901760, %v1140_v56  ;;  %v1137_v58 = vsel %vm588_vm1, %v1123_v55, 0 }
 0x243   :  { %v1211_v59 = vand.u32 4294901760, %v1137_v58 }
 0x244   :  { %v1222_v60 = vsub.f32 %v1140_v56, %v1221_v57 }
 0x245   :  { %v1212_v61 = vsub.f32 %v1137_v58, %v1211_v59 }
 0x246   :  { %v1223_v62 = vand.u32 4294901760, %v1222_v60 }
 0x247   :  { %v1213_v63 = vand.u32 4294901760, %v1212_v61 }
 0x248   :  { %v1224_v0 = vsub.f32 %v1222_v60, %v1223_v62 }
 0x249   :  { %v1214_v1 = vsub.f32 %v1212_v61, %v1213_v63 }
 0x24a   :  { %v1225_v3 = vand.u32 4294901760, %v1224_v0 }
 0x24b   :  { %v1215_v2 = vand.u32 4294901760, %v1214_v1 }
 0x24d   :  { %2445 = vmatprep.mubr.f32.mxu0 %v1215_v2 }
 0x24e   :  { %2446 = vmatmul.mubr.f32.vlgmr.msra.gmra.mrb[2].mxu0 %v1225_v3 }
 0x24f   :  { %2616 = vmatpush3.bf16.msra.mxu0 %v2613_v39  ;;  %2456 = vmatprep.mubr.f32.mxu0 %v1211_v59 }
 0x250   :  { %2618 = vmatprep.subr.bf16.mxu0 %v2617_v44 }
 0x253   :  { %2620 = vmatpush3.bf16.msra.mxu0 %v2617_v44 }
 0x254   :  { %2622 = vmatprep.subr.bf16.mxu0 %v2621_v45 }
 0x256   :  { %2457 = vmatmul.mubr.f32.vlgmr.msra.gmra.mrb[2].mxu0 %v1221_v57 }
 0x257   :  { %2624 = vmatpush3.bf16.msra.mxu0 %v2621_v45  ;;  %2467 = vmatprep.mubr.f32.mxu0 %v1212_v61 }
 0x258   :  { %2626 = vmatprep.subr.bf16.mxu0 %v2625_v46 }
 0x25b   :  { %2628 = vmatpush3.bf16.msra.mxu0 %v2625_v46 }
 0x25c   :  { %2630 = vmatprep.subr.bf16.mxu0 %v2877_v21 }
 0x25e   :  { %2468 = vmatmul.mubr.f32.vlgmr.msra.gmra.mrb[2].mxu0 %v1222_v60 }
 0x25f   :  { %2632 = vmatpush3.bf16.msra.mxu0 %v2877_v21  ;;  %2478 = vmatprep.mubr.f32.mxu0 %v1213_v63 }
 0x260   :  { %2634 = vmatprep.subr.bf16.mxu0 %v2887_v30 }
 0x263   :  { %2636 = vmatpush3.bf16.msra.mxu0 %v2887_v30 }
 0x264   :  { %2638 = vmatprep.subr.bf16.mxu0 %v2637_v47 }
 0x266   :  { %2479 = vmatmul.mubr.f32.vlgmr.msra.gmra.mrb[2].mxu0 %v1223_v62 }
 0x267   :  { %2640 = vmatpush3.bf16.msra.mxu0 %v2637_v47  ;;  %2489 = vmatprep.mubr.f32.mxu0 %v1211_v59 }
 0x268   :  { %2642 = vmatprep.subr.bf16.mxu0 %v2641_v48 }
 0x26b   :  { %2644 = vmatpush3.bf16.msra.mxu0 %v2641_v48 }
 0x26c   :  { %2646 = vmatprep.subr.bf16.mxu0 %v2877_v21 }
 0x26e   :  { %2490 = vmatmul.mubr.f32.vlgmr.msra.gmra.mrb[2].mxu0 %v1221_v57 }
 0x26f   :  { %2648 = vmatpush3.bf16.msra.mxu0 %v2877_v21  ;;  %2500 = vmatprep.mubr.f32.mxu0 %v1211_v59 }
 0x270   :  { %2650 = vmatprep.subr.bf16.mxu0 %v2887_v30 }
 0x273   :  { %2652 = vmatpush3.bf16.msra.mxu0 %v2887_v30 }
 0x276   :  { %2501 = vmatmul.mubr.f32.vlgmr.msra.gmra.mrb[2].mxu0 %v1221_v57 }
 0x349   :  { %v2502_v12 = vpop.f32.mrb[2].mxu0 }
 0x34a   :  { %v2657_v13 = vadd.f32 %v2502_v12, %v2214_v11  ;;  %v1660_v14 = vpop.f32.mrb[3].mxu0 }
 0x34b   :  { %v2658_v15 = vadd.f32 %v2214_v11, %v1660_v14 }
 0x34c   :  { %v1676_v16 = vmin.f32 %v2657_v13, 20.0  ;;  %vm1674_vm5 = vcmp.gt.f32.partialorder %v2657_v13, 20.0 }
 0x34d   :  { %v1675_v17 = vmin.f32 %v2658_v15, 20.0  ;;  %vm1673_vm8 = vcmp.gt.f32.partialorder %v2658_v15, 20.0 }
 0x34e   :  { %v1679_v18 = vmul.f32 1.442695, %v1676_v16 }
 0x34f   :  { %v1677_v19 = vmul.f32 1.442695, %v1675_v17 }
 0x350   :  { %2703 = vpow2.f32 %v1679_v18 }
 0x351   :  { %2705 = vpow2.f32 %v1677_v19 }
 0x35a   :  { %v2704_v20 = vpop.eup %2703 }
 0x35b   :  { %v2706_v21 = vpop.eup %2705  ;;  %v1690_v22 = vadd.f32 1.0, %v2704_v20  ;;  %v1693_v24 = vmul.f32 -0.5, %v2704_v20  ;;  %v1696_v29 = vand.u32 2147483647, %v2704_v20 }
 0x35c   :  { %v1681_v23 = vadd.f32 1.0, %v2706_v21  ;;  %v1684_v26 = vmul.f32 -0.5, %v2706_v21  ;;  %v1687_v31 = vand.u32 2147483647, %v2706_v21 }
 0x35d   :  { %2707 = vlog2.f32 %v1690_v22  ;;  %v1694_v27 = vadd.f32 1.0, %v1693_v24  ;;  %vm1697_vm4 = vcmp.lt.f32.partialorder %v1696_v29, 0.0004427343 }
 0x35e   :  { %2709 = vlog2.f32 %v1681_v23  ;;  %v1685_v30 = vadd.f32 1.0, %v1684_v26  ;;  %vm1688_vm7 = vcmp.lt.f32.partialorder %v1687_v31, 0.0004427343 }
 0x35f   :  { %v1695_v35 = vmul.f32 %v2704_v20, %v1694_v27 }
 0x360   :  { %v1686_v37 = vmul.f32 %v2706_v21, %v1685_v30 }
 0x367   :  { %v2708_v32 = vpop.eup %2707 }
 0x368   :  { %v2710_v33 = vpop.eup %2709  ;;  %v1692_v34 = vmul.f32 0.6931472, %v2708_v32 }
 0x369   :  { %v1683_v36 = vmul.f32 0.6931472, %v2710_v33 }
 0x36a   :  { %v1698_v38 = vsel %vm1697_vm4, %v1695_v35, %v1692_v34 }
 0x36b   :  { %v1700_v39 = vsel %vm1674_vm5, %v2657_v13, %v1698_v38  ;;  %v1689_v40 = vsel %vm1688_vm7, %v1686_v37, %v1683_v36 }
 0x36c   :  { %v1702_v41 = vsel %vm1672_vm3, %v2657_v13, %v1700_v39  ;;  %v1699_v42 = vsel %vm1673_vm8, %v2658_v15, %v1689_v40 }
 0x36d   :  { %v1709_v43 = vsel %vm1704_vm6, %v1702_v41, 0  ;;  %v1701_v44 = vsel %vm1672_vm3, %v2658_v15, %v1699_v42 }
 0x36e   :  { %v1791_v45 = vand.u32 4294901760, %v1709_v43  ;;  %v1706_v46 = vsel %vm1704_vm6, %v1701_v44, 0 }
 0x36f   :  { %v1781_v47 = vand.u32 4294901760, %v1706_v46 }
 0x370   :  { %v1792_v48 = vsub.f32 %v1709_v43, %v1791_v45 }
 0x371   :  { %v1782_v49 = vsub.f32 %v1706_v46, %v1781_v47 }
 0x372   :  { %v1793_v50 = vand.u32 4294901760, %v1792_v48 }
 0x373   :  { %v1783_v51 = vand.u32 4294901760, %v1782_v49 }
 0x374   :  { %v1794_v52 = vsub.f32 %v1792_v48, %v1793_v50 }
 0x375   :  { %v1784_v53 = vsub.f32 %v1782_v49, %v1783_v51 }
 0x376   :  { %v1795_v55 = vand.u32 4294901760, %v1794_v52 }
 0x377   :  { %v1785_v54 = vand.u32 4294901760, %v1784_v53 }
 0x379   :  { %2505 = vmatprep.mubr.f32.mxu1 %v1785_v54 }
 0x37a   :  { %2506 = vmatmul.mubr.f32.vlgmr.msra.gmra.mrb[2].mxu1 %v1795_v55 }
 0x37b   :  { %2509 = vmatpush3.msra.mxu1 %v1806_v10  ;;  %2510 = vmatprep.mubr.f32.mxu1 %v1781_v47 }
 0x37c   :  { %2513 = vmatprep.subr.mxu1 %v2912_v7 }
 0x382   :  { %2511 = vmatmul.mubr.f32.vlgmr.msra.gmra.mrb[2].mxu1 %v1791_v45 }
 0x383   :  { %2514 = vmatpush3.msra.mxu1 %v2912_v7  ;;  %2515 = vmatprep.mubr.f32.mxu1 %v1782_v49 }
 0x384   :  { %2518 = vmatprep.subr.mxu1 %v2907_v6 }
 0x38a   :  { %2516 = vmatmul.mubr.f32.vlgmr.msra.gmra.mrb[2].mxu1 %v1792_v48 }
 0x38b   :  { %2519 = vmatpush3.msra.mxu1 %v2907_v6  ;;  %2520 = vmatprep.mubr.f32.mxu1 %v1783_v51 }
 0x38c   :  { %2523 = vmatprep.subr.mxu1 %v2915_v8 }
 0x392   :  { %2521 = vmatmul.mubr.f32.vlgmr.msra.gmra.mrb[2].mxu1 %v1793_v50 }
 0x393   :  { %2524 = vmatpush3.msra.mxu1 %v2915_v8  ;;  %2525 = vmatprep.mubr.f32.mxu1 %v1781_v47 }
 0x394   :  { %2528 = vmatprep.subr.mxu1 %v2907_v6 }
 0x39a   :  { %2526 = vmatmul.mubr.f32.vlgmr.msra.gmra.mrb[2].mxu1 %v1791_v45 }
 0x39b   :  { %2529 = vmatpush3.msra.mxu1 %v2907_v6  ;;  %2530 = vmatprep.mubr.f32.mxu1 %v1781_v47 }
 0x3a2   :  { %2531 = vmatmul.mubr.f32.vlgmr.msra.gmra.mrb[2].mxu1 %v1791_v45 }
 0x475   :  { %v2532_v56 = vpop.f32.mrb[2].mxu1 }
 0x476   :  { %2205 = vst.msk [vmem:[%s2945_s8 + $0x8] sm:$0xff] %vm1704_vm6, %v2532_v56  ;;  %v2194_v57 = vpop.f32.mrb[3].mxu1 }
 0x477   :  { %2204 = vst.msk [vmem:[%s2945_s8] sm:$0xff] %vm1704_vm6, %v2194_v57 }
 0x478   :  { %2210 = vsyncpa [#allocation3], 1 }
 0x479   :  { %2211 = vsyncpa [#allocation5], 1 }

</bundles_post_ra>
